<compile_context>
chip_gen: v7x
topology: tpu7x:2x2x1
jax: 0.10.0
libtpu: 0.0.40
codegen_flags: <defaults>
</compile_context>

<pallas_src>
import numpy as np

import jax
import jax.numpy as jnp
from jax import lax
from jax.experimental import pallas as pl
from jax.experimental.pallas import tpu as pltpu


# --------------------------- operator construction -------------------------------


def _interp_matrix(size_in, size_out, dtype=jnp.float32):
    """(size_out, size_in) matrix realizing 1-D bilinear resize, align_corners=True."""
    if size_in == 1:
        return jnp.ones((size_out, 1), dtype)
    pos = jnp.arange(size_out, dtype=jnp.float32) * (size_in - 1) / (size_out - 1)
    i0 = jnp.floor(pos).astype(jnp.int32)
    i1 = jnp.minimum(i0 + 1, size_in - 1)
    frac = pos - i0.astype(jnp.float32)
    m = (jax.nn.one_hot(i0, size_in, dtype=jnp.float32) * (1.0 - frac)[:, None]
         + jax.nn.one_hot(i1, size_in, dtype=jnp.float32) * frac[:, None])
    return m.astype(dtype)


def _wexpand_matrix(Wi, Wo, C, dtype=jnp.float32):
    """(Wi*C, Wo*C) block matrix: bilinear W-resize acting on the fused (w, c) lane axis."""
    ax = _interp_matrix(Wi, Wo, jnp.float32)                       # (Wo, Wi)
    eye = jnp.eye(C, dtype=jnp.float32)
    m = jnp.einsum("ow,cd->wcod", ax, eye).reshape(Wi * C, Wo * C)
    return m.astype(dtype)


def _build_banded_conv_weights(w_hwio, W, out_dtype, split_c2=None):
    """Expand (3,3,Cin,Cout) HWIO conv weights into block-Toeplitz row-matmul form.

    Returns B of shape (3, W*Cin, W*Cout) such that, with image rows stored as
    fused lane vectors (and a 1-row zero halo along H), a SAME 3x3 conv is

        out_row[h] = sum_{kh=0..2}  xpad_row[h + kh] @ B[kh]

    The W-direction zero padding is encoded in the band structure of B.

    Input lane layout of the row vector:
      split_c2 is None : per-pixel interleave      lane = w*Cin + ci
      split_c2 = C2    : [x2 block | x1 block]     lane = w*C2 + ci        (ci <  C2)
                                                   lane = W*C2 + w*C1 + ci' (ci >= C2)
    """
    _, _, Cin, Cout = w_hwio.shape
    idx = jnp.arange(W)
    # S[kw, wp, w] = 1 iff input pixel wp == output pixel w + kw - 1 (implicit W zero-pad).
    S = jnp.stack(
        [(idx[:, None] == (idx[None, :] + kw - 1)).astype(jnp.float32) for kw in range(3)],
        axis=0)                                                     # (3, W, W)
    B = jnp.einsum("kpw,hkio->hpiwo", S, w_hwio.astype(jnp.float32))
    B = B.reshape(3, W * Cin, W * Cout)
    if split_c2 is not None:
        C2 = split_c2
        C1 = Cin - C2
        gi = np.empty(W * Cin, np.int32)                            # static, shape-only
        for wp in range(W):
            for ci in range(Cin):
                inter = wp * Cin + ci
                split = wp * C2 + ci if ci < C2 else W * C2 + wp * C1 + (ci - C2)
                gi[split] = inter
        B = B[:, jnp.asarray(gi), :]
    return B.astype(out_dtype)


# ----------------------------- Pallas kernel ------------------------------------


def up_double_conv_kernel(x2_ref, x1_ref, ay_ref, axw_ref,
                          w1_ref, b1_ref, w2_ref, b2_ref,
                          o_ref, xcat_s, mid_s):
    """Fused upsample(x1) + concat([x2, x1], C) + (conv3x3 -> ReLU) x 2.

    x2_ref : (Nb, H,  W*C2)    skip connection, fused lanes (bf16)
    x1_ref : (Nb, Hi, Wi*C1)   low-res decoder features, fused lanes (f32)
    ay_ref : (H, Hi)           H-direction bilinear operator (f32)
    axw_ref: (Wi*C1, W*C1)     W-direction bilinear operator, fused lanes (f32)
    w1_ref : (3, W*Cin, W*Cmid)  conv1 block-Toeplitz weights, [x2|x1] row layout (bf16)
    b1_ref : (1, W*Cmid)       conv1 bias tiled over W (f32)
    w2_ref : (3, W*Cmid, W*Cout) conv2 block-Toeplitz weights, per-pixel layout (bf16)
    b2_ref : (1, W*Cout)       conv2 bias tiled over W (f32)
    o_ref  : (Nb, H, W*Cout)   lane-dense output tile (f32)
    xcat_s : (Nb, H+2, W*Cin)  conv1 input scratch (bf16), rows 0 / H+1 are the halo
    mid_s  : (Nb, H+2, W*Cmid) conv1 activation scratch (bf16), same halo convention
    """
    Nb, H, WC2 = x2_ref.shape
    _, Hi, WiC1 = x1_ref.shape
    WCin = xcat_s.shape[-1]
    WCmid = mid_s.shape[-1]
    WCout = o_ref.shape[-1]
    WC1 = WCin - WC2

    # ---- bilinear 2x upsample of x1 (align_corners=True) as two matmuls (f32) ----
    zw = jnp.dot(x1_ref[...].reshape(Nb * Hi, WiC1), axw_ref[...],
                 preferred_element_type=jnp.float32)                 # (Nb*Hi, W*C1)
    zw = zw.reshape(Nb, Hi, WC1)
    ay = ay_ref[...]                                                 # (H, Hi)
    x1up = jnp.stack(
        [jnp.dot(ay, zw[n], preferred_element_type=jnp.float32) for n in range(Nb)],
        axis=0)                                                      # (Nb, H, W*C1)

    # ---- stage concat([x2, x1up], C) into the lane-fused conv-1 input ----------
    # Only the 1-row top/bottom halo is zeroed (SAME padding along H); the SAME
    # padding along W is folded into the banded weights.  Interiors are fully
    # overwritten each step, so halo-only re-zeroing stays correct under the
    # "parallel" batch split.
    zero_in = jnp.zeros((Nb, 1, WCin), xcat_s.dtype)
    xcat_s[:, 0:1, :] = zero_in
    xcat_s[:, H + 1:H + 2, :] = zero_in
    xcat_s[:, 1:H + 1, :WC2] = x2_ref[...]                           # x2 channels first
    xcat_s[:, 1:H + 1, WC2:] = x1up.astype(xcat_s.dtype)             # then upsampled x1

    def conv3x3_relu(src_ref, w3_ref, bias_row):
        """SAME 3x3 conv + bias + ReLU as three banded row matmuls, f32 accumulate."""
        kdim = src_ref.shape[-1]
        acc = jnp.dot(src_ref[:, 0:H, :].reshape(Nb * H, kdim), w3_ref[0],
                      preferred_element_type=jnp.float32)
        acc = acc + jnp.dot(src_ref[:, 1:H + 1, :].reshape(Nb * H, kdim), w3_ref[1],
                            preferred_element_type=jnp.float32)
        acc = acc + jnp.dot(src_ref[:, 2:H + 2, :].reshape(Nb * H, kdim), w3_ref[2],
                            preferred_element_type=jnp.float32)
        return jnp.maximum(acc + bias_row, 0.0)                       # (Nb*H, ·) f32

    # ---- conv1 + ReLU; activation stays in VMEM (bf16), never touches HBM ------
    y1 = conv3x3_relu(xcat_s, w1_ref, b1_ref[...])                    # (Nb*H, W*Cmid)
    zero_mid = jnp.zeros((Nb, 1, WCmid), mid_s.dtype)
    mid_s[:, 0:1, :] = zero_mid
    mid_s[:, H + 1:H + 2, :] = zero_mid
    mid_s[:, 1:H + 1, :] = y1.reshape(Nb, H, WCmid).astype(mid_s.dtype)

    # ---- conv2 + ReLU, lane-dense output store ---------------------------------
    y2 = conv3x3_relu(mid_s, w2_ref, b2_ref[...])                     # (Nb*H, W*Cout)
    o_ref[...] = y2.reshape(Nb, H, WCout).astype(o_ref.dtype)


def up_pallas(x1_nhwc, x2p_nhwc, w1, b1, w2, b2,
              compute_dtype=jnp.bfloat16, grid_steps=None):
    """upsample2x(x1) + cat([x2, x1], C) + double_conv, all in ONE pallas_call.

    x1_nhwc : (N, Hi, Wi, C1)  low-res decoder features (f32)
    x2p_nhwc: (N, H,  W,  C2)  skip connection, already F.pad'ed; H=2*Hi, W=2*Wi
    w1/w2   : HWIO (3,3,Cin,Cmid)/(3,3,Cmid,Cout); b1/b2: (Cmid,)/(Cout,)
    Returns NHWC float32 (N, H, W, Cout).
    """
    N, Hi, Wi, C1 = x1_nhwc.shape
    _, H, W, C2 = x2p_nhwc.shape
    Cin = C2 + C1
    Cmid = w1.shape[-1]
    Cout = w2.shape[-1]
    assert (H, W) == (2 * Hi, 2 * Wi), "padded skip must match the upsampled x1 size"
    assert w1.shape == (3, 3, Cin, Cmid) and w2.shape == (3, 3, Cmid, Cout)

    if grid_steps is None:
        # Keep 2 parallel steps so both v7x TensorCores get work; single-TC
        # v5e/v6e callers can pass grid_steps=1 to amortize per-step overhead.
        grid_steps = 2 if (N >= 2 and N % 2 == 0) else 1
    assert N % grid_steps == 0
    Nb = N // grid_steps

    # Lane-dense kernel inputs: last dim W*C (no last-dim-C tiles on the DMA path).
    x2f = x2p_nhwc.reshape(N, H, W * C2).astype(compute_dtype)
    x1f = x1_nhwc.reshape(N, Hi, Wi * C1).astype(jnp.float32)

    # Interpolation operators for the in-kernel bilinear upsample (tiny, f32).
    ay = _interp_matrix(Hi, H, jnp.float32)                           # (H, Hi)
    axw = _wexpand_matrix(Wi, W, C1, jnp.float32)                     # (Wi*C1, W*C1)

    # Banded (block-Toeplitz) conv weights for the fused-lane row matmuls.
    # conv1 input lane layout is [x2 block | x1 block]; conv2 is per-pixel interleave.
    # TODO(synk): these scale as W^2 * Cin * Cout; for large images tile W into
    # lane blocks (and add an H-row grid axis with a 2-row halo) instead of
    # expanding the whole row — needed before scaling on v7x's 64 MiB VMEM.
    w1b = _build_banded_conv_weights(w1, W, compute_dtype, split_c2=C2)  # (3, W*Cin, W*Cmid)
    w2b = _build_banded_conv_weights(w2, W, compute_dtype)               # (3, W*Cmid, W*Cout)
    b1r = jnp.tile(b1.astype(jnp.float32), W).reshape(1, W * Cmid)
    b2r = jnp.tile(b2.astype(jnp.float32), W).reshape(1, W * Cout)

    out = pl.pallas_call(
        up_double_conv_kernel,
        out_shape=jax.ShapeDtypeStruct((N, H, W * Cout), jnp.float32),
        grid=(grid_steps,),
        in_specs=[
            pl.BlockSpec((Nb, H, W * C2), lambda n: (n, 0, 0)),
            pl.BlockSpec((Nb, Hi, Wi * C1), lambda n: (n, 0, 0)),
            # Constant index_maps -> operators/weights/bias DMA'd once, reused.
            pl.BlockSpec((H, Hi), lambda n: (0, 0)),
            pl.BlockSpec((Wi * C1, W * C1), lambda n: (0, 0)),
            pl.BlockSpec((3, W * Cin, W * Cmid), lambda n: (0, 0, 0)),
            pl.BlockSpec((1, W * Cmid), lambda n: (0, 0)),
            pl.BlockSpec((3, W * Cmid, W * Cout), lambda n: (0, 0, 0)),
            pl.BlockSpec((1, W * Cout), lambda n: (0, 0)),
        ],
        out_specs=pl.BlockSpec((Nb, H, W * Cout), lambda n: (n, 0, 0)),
        scratch_shapes=[
            pltpu.VMEM((Nb, H + 2, W * Cin), compute_dtype),
            pltpu.VMEM((Nb, H + 2, W * Cmid), compute_dtype),
        ],
        compiler_params=pltpu.CompilerParams(
            dimension_semantics=("parallel",),
            vmem_limit_bytes=32 * 1024 * 1024,
        ),
    )(x2f, x1f, ay, axw, w1b, b1r, w2b, b2r)

    return out.reshape(N, H, W, Cout)


# ------------------------ wrapper (plain JAX, NHWC) -------------------------------
# TODO(synk): the NCHW<->NHWC transposes and the torch-quirk F.pad stay as thin
# wrapper ops (external layout contract); everything else runs inside the kernel.


def _pad_like_torch(x2_nhwc, diffX, diffY):
    """Replicates F.pad(x2, (diffX//2, int(diffX/2), diffY//2, int(diffY/2))) (NCHW),
    i.e. W padded by the X-diff and H padded by the Y-diff, here on an NHWC tensor."""
    pw_lo, pw_hi = diffX // 2, int(diffX / 2)
    ph_lo, ph_hi = diffY // 2, int(diffY / 2)
    cfg = ((0, 0, 0), (ph_lo, ph_hi, 0), (pw_lo, pw_hi, 0), (0, 0, 0))
    return lax.pad(x2_nhwc, jnp.array(0, x2_nhwc.dtype), cfg)


def up_forward(x1_nchw, x2_nchw, params, compute_dtype=jnp.bfloat16, grid_steps=None):
    """Forward pass of `up`; inputs/outputs are NCHW like PyTorch."""
    (w1, b1), (w2, b2) = params
    x1 = jnp.transpose(x1_nchw, (0, 2, 3, 1))   # NCHW -> NHWC (once)
    x2 = jnp.transpose(x2_nchw, (0, 2, 3, 1))
    Ho, Wo = 2 * x1.shape[1], 2 * x1.shape[2]   # upsampled x1 spatial size
    diffX = Ho - x2.shape[1]                    # PyTorch size()[2] (H) difference
    diffY = Wo - x2.shape[2]                    # PyTorch size()[3] (W) difference
    x2p = _pad_like_torch(x2, diffX, diffY)     # faithful replication of the quirk
    assert x2p.shape[1:3] == (Ho, Wo), (
        "padded skip tensor must match upsampled x1 spatially (torch.cat would fail)")
    y = up_pallas(x1, x2p, w1, b1, w2, b2,
                  compute_dtype=compute_dtype, grid_steps=grid_steps)
    return jnp.transpose(y, (0, 3, 1, 2))       # NHWC -> NCHW


# ------------------------------ reference & init ----------------------------------


def upsample2x_bilinear_align_corners(x):
    """PyTorch nn.Upsample(scale_factor=2, bilinear, align_corners=True), NHWC (reference)."""
    N, H, W, C = x.shape
    Ho, Wo = 2 * H, 2 * W

    def interp_1d(size_in, size_out):
        if size_in == 1:
            i0 = jnp.zeros((size_out,), jnp.int32)
            return i0, i0, jnp.zeros((size_out,), x.dtype)
        pos = jnp.arange(size_out, dtype=jnp.float32) * (size_in - 1) / (size_out - 1)
        i0 = jnp.floor(pos).astype(jnp.int32)
        i1 = jnp.minimum(i0 + 1, size_in - 1)
        frac = (pos - i0.astype(jnp.float32)).astype(x.dtype)
        return i0, i1, frac

    y0, y1, fy = interp_1d(H, Ho)
    x0, x1, fx = interp_1d(W, Wo)
    rows = (jnp.take(x, y0, axis=1) * (1.0 - fy)[None, :, None, None]
            + jnp.take(x, y1, axis=1) * fy[None, :, None, None])
    out = (jnp.take(rows, x0, axis=2) * (1.0 - fx)[None, None, :, None]
           + jnp.take(rows, x1, axis=2) * fx[None, None, :, None])
    return out


def init_conv_params(key, in_ch, out_ch):
    """Deterministic init matching PyTorch Conv2d defaults (kaiming-uniform bounds)."""
    k_w, k_b = jax.random.split(key)
    fan_in = in_ch * 3 * 3
    bound = 1.0 / jnp.sqrt(fan_in)
    w_oihw = jax.random.uniform(k_w, (out_ch, in_ch, 3, 3),
                                minval=-bound, maxval=bound, dtype=jnp.float32)
    b = jax.random.uniform(k_b, (out_ch,),
                           minval=-bound, maxval=bound, dtype=jnp.float32)
    return jnp.transpose(w_oihw, (2, 3, 1, 0)), b          # OIHW -> HWIO


def reference_up_forward(x1_nchw, x2_nchw, params):
    """Pure-JAX (f32, lax.conv) reference for correctness checking."""
    (w1, b1), (w2, b2) = params
    x1 = jnp.transpose(x1_nchw, (0, 2, 3, 1))
    x2 = jnp.transpose(x2_nchw, (0, 2, 3, 1))
    x1u = upsample2x_bilinear_align_corners(x1)
    diffX = x1u.shape[1] - x2.shape[1]
    diffY = x1u.shape[2] - x2.shape[2]
    x2p = _pad_like_torch(x2, diffX, diffY)
    x = jnp.concatenate([x2p, x1u], axis=-1)
    dn = lax.conv_dimension_numbers(x.shape, (3, 3, 1, 1), ("NHWC", "HWIO", "NHWC"))

    def conv(z, w, b):
        y = lax.conv_general_dilated(z, w, (1, 1), "SAME", dimension_numbers=dn)
        return jnp.maximum(y + b.reshape(1, 1, 1, -1), 0.0)

    y = conv(conv(x, w1, b1), w2, b2)
    return jnp.transpose(y, (0, 3, 1, 2))


if __name__ == "__main__":
    # up(in_ch=8, out_ch=8, bilinear=True): x1 and x2 each carry in_ch//2 = 4 channels;
    # x1 is half spatial resolution and gets bilinearly upsampled x2 before concat.
    in_ch, out_ch = 8, 8
    key = jax.random.PRNGKey(0)
    k_x1, k_x2, k_p1, k_p2 = jax.random.split(key, 4)

    x1 = jax.random.normal(k_x1, (2, in_ch // 2, 8, 8), dtype=jnp.float32)
    x2 = jax.random.normal(k_x2, (2, in_ch // 2, 16, 16), dtype=jnp.float32)
    params = (init_conv_params(k_p1, in_ch, out_ch),
              init_conv_params(k_p2, out_ch, out_ch))

    up_jit = jax.jit(lambda a, b: up_forward(a, b, params))
    out = jax.block_until_ready(up_jit(x1, x2))

    ref = reference_up_forward(x1, x2, params)
    assert out.shape == (2, out_ch, 16, 16)
    # bf16 MXU operands (f32 accumulation) -> looser tolerance than a pure-f32 path.
    max_diff = float(jnp.max(jnp.abs(out - ref)))
    assert jnp.allclose(out, ref, atol=5e-2, rtol=5e-2), \
        f"mismatch vs reference, max abs diff={max_diff}"

    print("KERNEL_OK")
</pallas_src>

<mosaic_0001>
module attributes {stable_mosaic.version = 11 : i64} {
  func.func @up_double_conv_kernel(%arg0: i32, %arg1: memref<1x16x64xbf16, #tpu.memory_space<vmem>>, %arg2: memref<1x8x32xf32, #tpu.memory_space<vmem>>, %arg3: memref<16x8xf32, #tpu.memory_space<vmem>>, %arg4: memref<32x64xf32, #tpu.memory_space<vmem>>, %arg5: memref<3x128x128xbf16, #tpu.memory_space<vmem>>, %arg6: memref<1x128xf32, #tpu.memory_space<vmem>>, %arg7: memref<3x128x128xbf16, #tpu.memory_space<vmem>>, %arg8: memref<1x128xf32, #tpu.memory_space<vmem>>, %arg9: memref<1x16x128xf32, #tpu.memory_space<vmem>>, %arg10: memref<1x18x128xbf16, #tpu.memory_space<vmem>>, %arg11: memref<1x18x128xbf16, #tpu.memory_space<vmem>>) attributes {dimension_semantics = [#tpu.dimension_semantics<parallel>], iteration_bounds = array<i64: 2>, scalar_prefetch = 0 : i64, scratch_operands = 2 : i64, tpu.core_type = #tpu.core_type<tc>, window_params = [{transform_indices = @transform_0, window_bounds = array<i64: 1, 16, 64>}, {transform_indices = @transform_1, window_bounds = array<i64: 1, 8, 32>}, {pipeline_mode = #tpu.pipeline_mode<synchronous>, transform_indices = @transform_2, window_bounds = array<i64: 16, 8>}, {pipeline_mode = #tpu.pipeline_mode<synchronous>, transform_indices = @transform_3, window_bounds = array<i64: 32, 64>}, {pipeline_mode = #tpu.pipeline_mode<synchronous>, transform_indices = @transform_4, window_bounds = array<i64: 3, 128, 128>}, {pipeline_mode = #tpu.pipeline_mode<synchronous>, transform_indices = @transform_5, window_bounds = array<i64: 1, 128>}, {pipeline_mode = #tpu.pipeline_mode<synchronous>, transform_indices = @transform_6, window_bounds = array<i64: 3, 128, 128>}, {pipeline_mode = #tpu.pipeline_mode<synchronous>, transform_indices = @transform_7, window_bounds = array<i64: 1, 128>}, {transform_indices = @transform_8, window_bounds = array<i64: 1, 16, 128>}]} {
    %c0 = arith.constant 0 : index
    %c0_0 = arith.constant 0 : index
    %c0_1 = arith.constant 0 : index
    %0 = vector.load %arg2[%c0, %c0_0, %c0_1] : memref<1x8x32xf32, #tpu.memory_space<vmem>>, vector<1x8x32xf32>
    %1 = vector.shape_cast %0 : vector<1x8x32xf32> to vector<8x32xf32>
    %c0_2 = arith.constant 0 : index
    %c0_3 = arith.constant 0 : index
    %2 = vector.load %arg4[%c0_2, %c0_3] : memref<32x64xf32, #tpu.memory_space<vmem>>, vector<32x64xf32>
    %cst = arith.constant dense<0.000000e+00> : vector<8x64xf32>
    %3 = tpu.matmul %1, %2, %cst {dimension_numbers = #tpu.dot_dimension_numbers<[1], [0], [0], [1], [0, 0, 1, 1], [], []>} : vector<8x32xf32>, vector<32x64xf32>, vector<8x64xf32> -> vector<8x64xf32>
    %4 = vector.shape_cast %3 : vector<8x64xf32> to vector<1x8x64xf32>
    %c0_4 = arith.constant 0 : index
    %c0_5 = arith.constant 0 : index
    %5 = vector.load %arg3[%c0_4, %c0_5] : memref<16x8xf32, #tpu.memory_space<vmem>>, vector<16x8xf32>
    %6 = vector.shape_cast %4 : vector<1x8x64xf32> to vector<8x64xf32>
    %cst_6 = arith.constant dense<0.000000e+00> : vector<16x64xf32>
    %7 = tpu.matmul %5, %6, %cst_6 {dimension_numbers = #tpu.dot_dimension_numbers<[1], [0], [0], [1], [0, 0, 1, 1], [], []>} : vector<16x8xf32>, vector<8x64xf32>, vector<16x64xf32> -> vector<16x64xf32>
    %8 = vector.shape_cast %7 : vector<16x64xf32> to vector<1x16x64xf32>
    %cst_7 = arith.constant 0.000000e+00 : bf16
    %9 = vector.broadcast %cst_7 : bf16 to vector<1x1x128xbf16>
    %c0_8 = arith.constant 0 : index
    %c0_9 = arith.constant 0 : index
    %c0_10 = arith.constant 0 : index
    %10 = vector.load %arg10[%c0_8, %c0_9, %c0_10] : memref<1x18x128xbf16, #tpu.memory_space<vmem>>, vector<1x1x128xbf16>
    tpu.vector_store %arg10[%c0_8, %c0_9, %c0_10], %9 {strides = array<i32>} : memref<1x18x128xbf16, #tpu.memory_space<vmem>>, vector<1x1x128xbf16>,
    %c0_11 = arith.constant 0 : index
    %c17 = arith.constant 17 : index
    %c0_12 = arith.constant 0 : index
    %11 = vector.load %arg10[%c0_11, %c17, %c0_12] : memref<1x18x128xbf16, #tpu.memory_space<vmem>>, vector<1x1x128xbf16>
    tpu.vector_store %arg10[%c0_11, %c17, %c0_12], %9 {strides = array<i32>} : memref<1x18x128xbf16, #tpu.memory_space<vmem>>, vector<1x1x128xbf16>,
    %c0_13 = arith.constant 0 : index
    %c0_14 = arith.constant 0 : index
    %c0_15 = arith.constant 0 : index
    %12 = vector.load %arg1[%c0_13, %c0_14, %c0_15] : memref<1x16x64xbf16, #tpu.memory_space<vmem>>, vector<1x16x64xbf16>
    %c0_16 = arith.constant 0 : index
    %c1 = arith.constant 1 : index
    %c0_17 = arith.constant 0 : index
    %13 = vector.load %arg10[%c0_16, %c1, %c0_17] : memref<1x18x128xbf16, #tpu.memory_space<vmem>>, vector<1x16x64xbf16>
    tpu.vector_store %arg10[%c0_16, %c1, %c0_17], %12 {strides = array<i32>} : memref<1x18x128xbf16, #tpu.memory_space<vmem>>, vector<1x16x64xbf16>,
    %14 = arith.truncf %8 : vector<1x16x64xf32> to vector<1x16x64xbf16>
    %c0_18 = arith.constant 0 : index
    %c1_19 = arith.constant 1 : index
    %c64 = arith.constant 64 : index
    %15 = vector.load %arg10[%c0_18, %c1_19, %c64] : memref<1x18x128xbf16, #tpu.memory_space<vmem>>, vector<1x16x64xbf16>
    tpu.vector_store %arg10[%c0_18, %c1_19, %c64], %14 {strides = array<i32>} : memref<1x18x128xbf16, #tpu.memory_space<vmem>>, vector<1x16x64xbf16>,
    %c0_20 = arith.constant 0 : index
    %c0_21 = arith.constant 0 : index
    %16 = vector.load %arg6[%c0_20, %c0_21] : memref<1x128xf32, #tpu.memory_space<vmem>>, vector<1x128xf32>
    %c0_22 = arith.constant 0 : index
    %c0_23 = arith.constant 0 : index
    %c0_24 = arith.constant 0 : index
    %17 = vector.load %arg10[%c0_22, %c0_23, %c0_24] : memref<1x18x128xbf16, #tpu.memory_space<vmem>>, vector<1x16x128xbf16>
    %18 = vector.shape_cast %17 : vector<1x16x128xbf16> to vector<16x128xbf16>
    %c0_25 = arith.constant 0 : index
    %c0_26 = arith.constant 0 : index
    %c0_27 = arith.constant 0 : index
    %19 = vector.load %arg5[%c0_25, %c0_26, %c0_27] : memref<3x128x128xbf16, #tpu.memory_space<vmem>>, vector<1x128x128xbf16>
    %20 = vector.shape_cast %19 : vector<1x128x128xbf16> to vector<128x128xbf16>
    %cst_28 = arith.constant dense<0.000000e+00> : vector<16x128xf32>
    %21 = tpu.matmul %18, %20, %cst_28 {dimension_numbers = #tpu.dot_dimension_numbers<[1], [0], [0], [1], [0, 0, 1, 1], [], []>} : vector<16x128xbf16>, vector<128x128xbf16>, vector<16x128xf32> -> vector<16x128xf32>
    %c0_29 = arith.constant 0 : index
    %c1_30 = arith.constant 1 : index
    %c0_31 = arith.constant 0 : index
    %22 = vector.load %arg10[%c0_29, %c1_30, %c0_31] : memref<1x18x128xbf16, #tpu.memory_space<vmem>>, vector<1x16x128xbf16>
    %23 = vector.shape_cast %22 : vector<1x16x128xbf16> to vector<16x128xbf16>
    %c1_32 = arith.constant 1 : index
    %c0_33 = arith.constant 0 : index
    %c0_34 = arith.constant 0 : index
    %24 = vector.load %arg5[%c1_32, %c0_33, %c0_34] : memref<3x128x128xbf16, #tpu.memory_space<vmem>>, vector<1x128x128xbf16>
    %25 = vector.shape_cast %24 : vector<1x128x128xbf16> to vector<128x128xbf16>
    %cst_35 = arith.constant dense<0.000000e+00> : vector<16x128xf32>
    %26 = tpu.matmul %23, %25, %cst_35 {dimension_numbers = #tpu.dot_dimension_numbers<[1], [0], [0], [1], [0, 0, 1, 1], [], []>} : vector<16x128xbf16>, vector<128x128xbf16>, vector<16x128xf32> -> vector<16x128xf32>
    %27 = arith.addf %21, %26 : vector<16x128xf32>
    %c0_36 = arith.constant 0 : index
    %c2 = arith.constant 2 : index
    %c0_37 = arith.constant 0 : index
    %28 = vector.load %arg10[%c0_36, %c2, %c0_37] : memref<1x18x128xbf16, #tpu.memory_space<vmem>>, vector<1x16x128xbf16>
    %29 = vector.shape_cast %28 : vector<1x16x128xbf16> to vector<16x128xbf16>
    %c2_38 = arith.constant 2 : index
    %c0_39 = arith.constant 0 : index
    %c0_40 = arith.constant 0 : index
    %30 = vector.load %arg5[%c2_38, %c0_39, %c0_40] : memref<3x128x128xbf16, #tpu.memory_space<vmem>>, vector<1x128x128xbf16>
    %31 = vector.shape_cast %30 : vector<1x128x128xbf16> to vector<128x128xbf16>
    %cst_41 = arith.constant dense<0.000000e+00> : vector<16x128xf32>
    %32 = tpu.matmul %29, %31, %cst_41 {dimension_numbers = #tpu.dot_dimension_numbers<[1], [0], [0], [1], [0, 0, 1, 1], [], []>} : vector<16x128xbf16>, vector<128x128xbf16>, vector<16x128xf32> -> vector<16x128xf32>
    %33 = arith.addf %27, %32 : vector<16x128xf32>
    %34 = vector.broadcast %16 : vector<1x128xf32> to vector<16x128xf32>
    %35 = arith.addf %33, %34 : vector<16x128xf32>
    %cst_42 = arith.constant 0.000000e+00 : f32
    %36 = vector.broadcast %cst_42 : f32 to vector<16x128xf32>
    %37 = arith.maximumf %35, %36 : vector<16x128xf32>
    %cst_43 = arith.constant 0.000000e+00 : bf16
    %38 = vector.broadcast %cst_43 : bf16 to vector<1x1x128xbf16>
    %c0_44 = arith.constant 0 : index
    %c0_45 = arith.constant 0 : index
    %c0_46 = arith.constant 0 : index
    %39 = vector.load %arg11[%c0_44, %c0_45, %c0_46] : memref<1x18x128xbf16, #tpu.memory_space<vmem>>, vector<1x1x128xbf16>
    tpu.vector_store %arg11[%c0_44, %c0_45, %c0_46], %38 {strides = array<i32>} : memref<1x18x128xbf16, #tpu.memory_space<vmem>>, vector<1x1x128xbf16>,
    %c0_47 = arith.constant 0 : index
    %c17_48 = arith.constant 17 : index
    %c0_49 = arith.constant 0 : index
    %40 = vector.load %arg11[%c0_47, %c17_48, %c0_49] : memref<1x18x128xbf16, #tpu.memory_space<vmem>>, vector<1x1x128xbf16>
    tpu.vector_store %arg11[%c0_47, %c17_48, %c0_49], %38 {strides = array<i32>} : memref<1x18x128xbf16, #tpu.memory_space<vmem>>, vector<1x1x128xbf16>,
    %41 = vector.shape_cast %37 : vector<16x128xf32> to vector<1x16x128xf32>
    %42 = arith.truncf %41 : vector<1x16x128xf32> to vector<1x16x128xbf16>
    %c0_50 = arith.constant 0 : index
    %c1_51 = arith.constant 1 : index
    %c0_52 = arith.constant 0 : index
    %43 = vector.load %arg11[%c0_50, %c1_51, %c0_52] : memref<1x18x128xbf16, #tpu.memory_space<vmem>>, vector<1x16x128xbf16>
    tpu.vector_store %arg11[%c0_50, %c1_51, %c0_52], %42 {strides = array<i32>} : memref<1x18x128xbf16, #tpu.memory_space<vmem>>, vector<1x16x128xbf16>,
    %c0_53 = arith.constant 0 : index
    %c0_54 = arith.constant 0 : index
    %44 = vector.load %arg8[%c0_53, %c0_54] : memref<1x128xf32, #tpu.memory_space<vmem>>, vector<1x128xf32>
    %c0_55 = arith.constant 0 : index
    %c0_56 = arith.constant 0 : index
    %c0_57 = arith.constant 0 : index
    %45 = vector.load %arg11[%c0_55, %c0_56, %c0_57] : memref<1x18x128xbf16, #tpu.memory_space<vmem>>, vector<1x16x128xbf16>
    %46 = vector.shape_cast %45 : vector<1x16x128xbf16> to vector<16x128xbf16>
    %c0_58 = arith.constant 0 : index
    %c0_59 = arith.constant 0 : index
    %c0_60 = arith.constant 0 : index
    %47 = vector.load %arg7[%c0_58, %c0_59, %c0_60] : memref<3x128x128xbf16, #tpu.memory_space<vmem>>, vector<1x128x128xbf16>
    %48 = vector.shape_cast %47 : vector<1x128x128xbf16> to vector<128x128xbf16>
    %cst_61 = arith.constant dense<0.000000e+00> : vector<16x128xf32>
    %49 = tpu.matmul %46, %48, %cst_61 {dimension_numbers = #tpu.dot_dimension_numbers<[1], [0], [0], [1], [0, 0, 1, 1], [], []>} : vector<16x128xbf16>, vector<128x128xbf16>, vector<16x128xf32> -> vector<16x128xf32>
    %c0_62 = arith.constant 0 : index
    %c1_63 = arith.constant 1 : index
    %c0_64 = arith.constant 0 : index
    %50 = vector.load %arg11[%c0_62, %c1_63, %c0_64] : memref<1x18x128xbf16, #tpu.memory_space<vmem>>, vector<1x16x128xbf16>
    %51 = vector.shape_cast %50 : vector<1x16x128xbf16> to vector<16x128xbf16>
    %c1_65 = arith.constant 1 : index
    %c0_66 = arith.constant 0 : index
    %c0_67 = arith.constant 0 : index
    %52 = vector.load %arg7[%c1_65, %c0_66, %c0_67] : memref<3x128x128xbf16, #tpu.memory_space<vmem>>, vector<1x128x128xbf16>
    %53 = vector.shape_cast %52 : vector<1x128x128xbf16> to vector<128x128xbf16>
    %cst_68 = arith.constant dense<0.000000e+00> : vector<16x128xf32>
    %54 = tpu.matmul %51, %53, %cst_68 {dimension_numbers = #tpu.dot_dimension_numbers<[1], [0], [0], [1], [0, 0, 1, 1], [], []>} : vector<16x128xbf16>, vector<128x128xbf16>, vector<16x128xf32> -> vector<16x128xf32>
    %55 = arith.addf %49, %54 : vector<16x128xf32>
    %c0_69 = arith.constant 0 : index
    %c2_70 = arith.constant 2 : index
    %c0_71 = arith.constant 0 : index
    %56 = vector.load %arg11[%c0_69, %c2_70, %c0_71] : memref<1x18x128xbf16, #tpu.memory_space<vmem>>, vector<1x16x128xbf16>
    %57 = vector.shape_cast %56 : vector<1x16x128xbf16> to vector<16x128xbf16>
    %c2_72 = arith.constant 2 : index
    %c0_73 = arith.constant 0 : index
    %c0_74 = arith.constant 0 : index
    %58 = vector.load %arg7[%c2_72, %c0_73, %c0_74] : memref<3x128x128xbf16, #tpu.memory_space<vmem>>, vector<1x128x128xbf16>
    %59 = vector.shape_cast %58 : vector<1x128x128xbf16> to vector<128x128xbf16>
    %cst_75 = arith.constant dense<0.000000e+00> : vector<16x128xf32>
    %60 = tpu.matmul %57, %59, %cst_75 {dimension_numbers = #tpu.dot_dimension_numbers<[1], [0], [0], [1], [0, 0, 1, 1], [], []>} : vector<16x128xbf16>, vector<128x128xbf16>, vector<16x128xf32> -> vector<16x128xf32>
    %61 = arith.addf %55, %60 : vector<16x128xf32>
    %62 = vector.broadcast %44 : vector<1x128xf32> to vector<16x128xf32>
    %63 = arith.addf %61, %62 : vector<16x128xf32>
    %cst_76 = arith.constant 0.000000e+00 : f32
    %64 = vector.broadcast %cst_76 : f32 to vector<16x128xf32>
    %65 = arith.maximumf %63, %64 : vector<16x128xf32>
    %66 = vector.shape_cast %65 : vector<16x128xf32> to vector<1x16x128xf32>
    %c0_77 = arith.constant 0 : index
    %c0_78 = arith.constant 0 : index
    %c0_79 = arith.constant 0 : index
    %67 = vector.load %arg9[%c0_77, %c0_78, %c0_79] : memref<1x16x128xf32, #tpu.memory_space<vmem>>, vector<1x16x128xf32>
    tpu.vector_store %arg9[%c0_77, %c0_78, %c0_79], %66 {strides = array<i32>} : memref<1x16x128xf32, #tpu.memory_space<vmem>>, vector<1x16x128xf32>,
    return
  }
  func.func @transform_0(%arg0: i32) -> (i32, i32, i32) {
    %c0_i32 = arith.constant 0 : i32
    %c0_i32_0 = arith.constant 0 : i32
    %c0_i32_1 = arith.constant 0 : i32
    return %arg0, %c0_i32, %c0_i32_0 : i32, i32, i32
  }
  func.func @transform_1(%arg0: i32) -> (i32, i32, i32) {
    %c0_i32 = arith.constant 0 : i32
    %c0_i32_0 = arith.constant 0 : i32
    %c0_i32_1 = arith.constant 0 : i32
    return %arg0, %c0_i32, %c0_i32_0 : i32, i32, i32
  }
  func.func @transform_2(%arg0: i32) -> (i32, i32) {
    %c0_i32 = arith.constant 0 : i32
    %c0_i32_0 = arith.constant 0 : i32
    %c0_i32_1 = arith.constant 0 : i32
    return %c0_i32, %c0_i32_0 : i32, i32
  }
  func.func @transform_3(%arg0: i32) -> (i32, i32) {
    %c0_i32 = arith.constant 0 : i32
    %c0_i32_0 = arith.constant 0 : i32
    %c0_i32_1 = arith.constant 0 : i32
    return %c0_i32, %c0_i32_0 : i32, i32
  }
  func.func @transform_4(%arg0: i32) -> (i32, i32, i32) {
    %c0_i32 = arith.constant 0 : i32
    %c0_i32_0 = arith.constant 0 : i32
    %c0_i32_1 = arith.constant 0 : i32
    %c0_i32_2 = arith.constant 0 : i32
    return %c0_i32, %c0_i32_0, %c0_i32_1 : i32, i32, i32
  }
  func.func @transform_5(%arg0: i32) -> (i32, i32) {
    %c0_i32 = arith.constant 0 : i32
    %c0_i32_0 = arith.constant 0 : i32
    %c0_i32_1 = arith.constant 0 : i32
    return %c0_i32, %c0_i32_0 : i32, i32
  }
  func.func @transform_6(%arg0: i32) -> (i32, i32, i32) {
    %c0_i32 = arith.constant 0 : i32
    %c0_i32_0 = arith.constant 0 : i32
    %c0_i32_1 = arith.constant 0 : i32
    %c0_i32_2 = arith.constant 0 : i32
    return %c0_i32, %c0_i32_0, %c0_i32_1 : i32, i32, i32
  }
  func.func @transform_7(%arg0: i32) -> (i32, i32) {
    %c0_i32 = arith.constant 0 : i32
    %c0_i32_0 = arith.constant 0 : i32
    %c0_i32_1 = arith.constant 0 : i32
    return %c0_i32, %c0_i32_0 : i32, i32
  }
  func.func @transform_8(%arg0: i32) -> (i32, i32, i32) {
    %c0_i32 = arith.constant 0 : i32
    %c0_i32_0 = arith.constant 0 : i32
    %c0_i32_1 = arith.constant 0 : i32
    return %arg0, %c0_i32, %c0_i32_0 : i32, i32, i32
  }
}

</mosaic_0001>

<bundles_post_ra>
// kernel: tile.10
= control target key start
LH: loop header
LB: loop body
LE: loop exit
PB: predicated region body
PF: predicated region fallthrough
CT: control target
= control target key end

     0   :  { %s28_s0 = inlined_call_operand.vmem [shape: f32[8], index: 0, kind: input, shape index: {}]   ;;  %s29_s1 = inlined_call_operand.vmem [shape: f32[16,8], index: 1, kind: output, shape index: {}]  }
   0x1   :  { %v4_v0 = vld [vmem:[%s28_s0] ss:$0 sm:$0xff] }
   0x2   :  { %5 = vst [vmem:[%s29_s1] sm:$0xff] %v4_v0  ;;  %8 = vst [vmem:[%s29_s1 + $0x8] sm:$0xff] %v4_v0 }

// kernel: tile.11
= control target key start
LH: loop header
LB: loop body
LE: loop exit
PB: predicated region body
PF: predicated region fallthrough
CT: control target
= control target key end

     0   :  { %s131_s10 = smov 120   ;;  %s132_s11 = smov 104   ;;  %vm3_vm0 = vcmask 64512   ;;  %vm9_vm1 = vcmask 1048512   ;;  %vm15_vm2 = vcmask 982912   ;;  %vm21_vm3 = vcmask 917312   ;;  %s207_s0 = inlined_call_operand.vmem [shape: f32[16,8], index: 0, kind: input, shape index: {}]   ;;  %s208_s1 = inlined_call_operand.vmem [shape: f32[1,128], index: 1, kind: output, shape index: {}]  }
   0x1   :  { %v101_v0 = vld [vmem:[%s207_s0 + $0xf] sm:$0x1]   ;;  %v103_v1 = vld [vmem:[%s207_s0 + $0xd] sm:$0x1]   ;;  %v102_v2 = vld [vmem:[%s207_s0 + $0xe] sm:$0x1]  }
   0x2   :  { %7 = vrot.lane.b32.xlu0 %v101_v0, %s131_s10  ;;  %19 = vrot.lane.b32.xlu1 %v103_v1, %s132_s11  ;;  %v104_v3 = vld [vmem:[%s207_s0 + $0xc] sm:$0x1]   ;;  %s133_s16 = smov 112   ;;  %s134_s17 = smov 96   ;;  %v105_v4 = vld [vmem:[%s207_s0 + $0xb] sm:$0x1]  }
   0x3   :  { %v106_v5 = vld [vmem:[%s207_s0 + $0xa] sm:$0x1]   ;;  %v2_v6 = vld [vmem:[%s207_s0] sm:$0x1]   ;;  %s135_s24 = smov 88   ;;  %s136_s25 = smov 80  }
   0x4   :  { %4 = vst.msk [vmem:[#allocation0] sm:$0x1] %vm3_vm0, %v2_v6   ;;  %v107_v7 = vld [vmem:[%s207_s0 + $0x9] sm:$0x1]   ;;  %v108_v8 = vld [vmem:[%s207_s0 + $0x8] sm:$0x1]  }
   0x5   :  { %s137_s30 = smov 72   ;;  %s138_s2 = smov 64   ;;  %v109_v9 = vld [vmem:[%s207_s0 + $0x7] sm:$0x1]   ;;  %v110_v10 = vld [vmem:[%s207_s0 + $0x6] sm:$0x1]  }
   0x6   :  { %13 = vrot.lane.b32.xlu0 %v102_v2, %s133_s16  ;;  %25 = vrot.lane.b32.xlu1 %v104_v3, %s134_s17  ;;  %s139_s7 = smov 56   ;;  %s140_s8 = smov 48   ;;  %v111_v11 = vld [vmem:[%s207_s0 + $0x5] sm:$0x1]   ;;  %v112_v12 = vld [vmem:[%s207_s0 + $0x4] sm:$0x1]  }
   0x7   :  { %s141_s13 = smov 40   ;;  %s142_s14 = smov 32   ;;  %v113_v13 = vld [vmem:[%s207_s0 + $0x3] sm:$0x1]   ;;  %v114_v14 = vld [vmem:[%s207_s0 + $0x2] sm:$0x1]  }
   0x8   :  { %s143_s19 = smov 24   ;;  %s144_s20 = smov 16   ;;  %v115_v15 = vld [vmem:[%s207_s0 + $0x1] sm:$0x1]   ;;  %vm27_vm4 = vcmask 851712   ;;  %vm33_vm5 = vcmask 786112  }
   0x9   :  { %s145_s0 = smov 8   ;;  %vm39_vm6 = vcmask 720512   ;;  %vm45_vm7 = vcmask 654912   ;;  %vm51_vm8 = vcmask 589312   ;;  %vm57_vm9 = vcmask 523712  }
   0xa   :  { %31 = vrot.lane.b32.xlu0 %v105_v4, %s135_s24  ;;  %37 = vrot.lane.b32.xlu1 %v106_v5, %s136_s25  ;;  %vm63_vm10 = vcmask 458112   ;;  %vm69_vm11 = vcmask 392512   ;;  %vm75_vm12 = vcmask 326912   ;;  %vm81_vm13 = vcmask 261312  }
   0xb   :  { %vm87_vm14 = vcmask 195712   ;;  %vm93_vm15 = vcmask 130112  }
   0xe   :  { %43 = vrot.lane.b32.xlu0 %v107_v7, %s137_s30  ;;  %49 = vrot.lane.b32.xlu1 %v108_v8, %s138_s2 }
  0x12   :  { %55 = vrot.lane.b32.xlu0 %v109_v9, %s139_s7  ;;  %61 = vrot.lane.b32.xlu1 %v110_v10, %s140_s8 }
  0x16   :  { %67 = vrot.lane.b32.xlu0 %v111_v11, %s141_s13  ;;  %73 = vrot.lane.b32.xlu1 %v112_v12, %s142_s14 }
  0x1a   :  { %79 = vrot.lane.b32.xlu0 %v113_v13, %s143_s19  ;;  %85 = vrot.lane.b32.xlu1 %v114_v14, %s144_s20 }
  0x1e   :  { %91 = vrot.lane.b32.xlu0 %v115_v15, %s145_s0 }
  0x74   :  { %v8_v16 = vpop.permute.xlu0 %7   ;;  %v20_v17 = vpop.permute.xlu1 %19  }
  0x75   :  { %10 = vst.msk [vmem:[#allocation0] sm:$0x1] %vm9_vm1, %v8_v16  }
  0x78   :  { %v14_v18 = vpop.permute.xlu0 %13   ;;  %v26_v19 = vpop.permute.xlu1 %25  }
  0x79   :  { %16 = vst.msk [vmem:[#allocation0] sm:$0x1] %vm15_vm2, %v14_v18  }
  0x7a   :  { %22 = vst.msk [vmem:[#allocation0] sm:$0x1] %vm21_vm3, %v20_v17  }
  0x7b   :  { %28 = vst.msk [vmem:[#allocation0] sm:$0x1] %vm27_vm4, %v26_v19  }
  0x7c   :  { %v32_v20 = vpop.permute.xlu0 %31   ;;  %v38_v21 = vpop.permute.xlu1 %37  }
  0x7d   :  { %34 = vst.msk [vmem:[#allocation0] sm:$0x1] %vm33_vm5, %v32_v20  }
  0x7e   :  { %40 = vst.msk [vmem:[#allocation0] sm:$0x1] %vm39_vm6, %v38_v21  }
  0x80   :  { %v44_v22 = vpop.permute.xlu0 %43   ;;  %v50_v23 = vpop.permute.xlu1 %49  }
  0x81   :  { %46 = vst.msk [vmem:[#allocation0] sm:$0x1] %vm45_vm7, %v44_v22  }
  0x82   :  { %52 = vst.msk [vmem:[#allocation0] sm:$0x1] %vm51_vm8, %v50_v23  }
  0x84   :  { %v56_v24 = vpop.permute.xlu0 %55   ;;  %v62_v25 = vpop.permute.xlu1 %61  }
  0x85   :  { %58 = vst.msk [vmem:[#allocation0] sm:$0x1] %vm57_vm9, %v56_v24  }
  0x86   :  { %64 = vst.msk [vmem:[#allocation0] sm:$0x1] %vm63_vm10, %v62_v25  }
  0x88   :  { %v68_v26 = vpop.permute.xlu0 %67   ;;  %v74_v27 = vpop.permute.xlu1 %73  }
  0x89   :  { %70 = vst.msk [vmem:[#allocation0] sm:$0x1] %vm69_vm11, %v68_v26  }
  0x8a   :  { %76 = vst.msk [vmem:[#allocation0] sm:$0x1] %vm75_vm12, %v74_v27  }
  0x8c   :  { %v80_v28 = vpop.permute.xlu0 %79   ;;  %v86_v29 = vpop.permute.xlu1 %85  }
  0x8d   :  { %82 = vst.msk [vmem:[#allocation0] sm:$0x1] %vm81_vm13, %v80_v28  }
  0x8e   :  { %88 = vst.msk [vmem:[#allocation0] sm:$0x1] %vm87_vm14, %v86_v29  }
  0x90   :  { %v92_v30 = vpop.permute.xlu0 %91  }
  0x91   :  { %94 = vst.msk [vmem:[#allocation0] sm:$0x1] %vm93_vm15, %v92_v30  }
  0x98   :  { %v98_v31 = vld [vmem:[#allocation0] sm:$0x1] }
  0x99   :  { %100 = vst [vmem:[%s208_s1] sm:$0x1] %v98_v31 }

// kernel: _lambda_.1
= control target key start
LH: loop header
LB: loop body
LE: loop exit
PB: predicated region body
PF: predicated region fallthrough
CT: control target
= control target key end

     0   :  { %s1888_s27 = smov 0   ;;  %s2184_s0 = inlined_call_operand.vmem [shape: bf16[2,16,64], index: 0, kind: input, shape index: {}]   ;;  %s2185_s1 = inlined_call_operand.vmem [shape: f32[2,8,32], index: 1, kind: input, shape index: {}]   ;;  %s2186_s2 = inlined_call_operand.vmem [shape: f32[16,8], index: 2, kind: input, shape index: {}]   ;;  %s2187_s3 = inlined_call_operand.vmem [shape: f32[32,64], index: 3, kind: input, shape index: {}]   ;;  %s2188_s4 = inlined_call_operand.vmem [shape: bf16[3,128,128], index: 4, kind: input, shape index: {}]   ;;  %s2189_s5 = inlined_call_operand.vmem [shape: f32[1,128], index: 5, kind: input, shape index: {}]   ;;  %s2190_s6 = inlined_call_operand.vmem [shape: bf16[3,128,128], index: 6, kind: input, shape index: {}]   ;;  %s2191_s7 = inlined_call_operand.vmem [shape: f32[1,128], index: 7, kind: input, shape index: {}]   ;;  %s2192_s8 = inlined_call_operand.vmem [shape: f32[2,16,128], index: 8, kind: output, shape index: {}]  }
   0x1 LB: > { %s1416_s28 = sadd.s32 4294967295, %s1837_s27   ;;  %p1420_p0 = scmp.ge.s32.totalorder %s1837_s27, 1  ;;  %s1837_s27 = sphi %s1888_s27, %s18_s27  }
   0x2   : > { %p271_p1 = scmp.lt.s32.totalorder %s1837_s27, 3 }
   0x4   : > { %p272_p2 = pnand %p1420_p0, %p271_p1 }
   0x5   : > { %v325_v0 = vld [vmem:[%s2187_s3] sm:$0xff] (!%p272_p2)  ;;  %v326_v1 = vld [vmem:[%s2187_s3 + $0x8] sm:$0xff] (!%p272_p2)  ;;  %v327_v2 = vld [vmem:[%s2187_s3 + $0x10] sm:$0xff] (!%p272_p2)  ;;  %v1839_v3 = vmov (!%p272_p2), 0.0|0.0   ;;  %vm1840_vm0 = vmmov (!%p272_p2), 0   ;;  %v1841_v6 = vmov (!%p272_p2), 0.0  }
   0x6   : > { %275 = sbr.rel (%p272_p2) target bundleno = 1119 (0x45f), region = 52  ;;  %1759 = vmatprep.subr.bf16.mxu0 (!%p272_p2), %v1839_v3  ;;  %v1760_v4 = vpack.c.bf16 (!%p272_p2), %v326_v1, %v325_v0  ;;  %v328_v5 = vld [vmem:[%s2187_s3 + $0x18] sm:$0xff] (!%p272_p2)  ;;  %1631 = vmatprep.mubr.msk.f32.mxu0 (!%p272_p2), %vm1840_vm0, %v1841_v6  ;;  %p309_p3 = scmp.lt.s32.totalorder (!%p272_p2), %s1416_s28, 1  ;;  %vm329_vm1 = vcmask (!%p272_p2), 261120   ;;  %v403_v9 = vld [vmem:[%s2186_s2] sm:$0xff] (!%p272_p2)  ;;  %vm405_vm2 = vcmask (!%p272_p2), 64512  }
   0x7   : > { %v1763_v7 = vpack.c.bf16 (!%p272_p2), %v328_v5, %v327_v2  ;;  %1636 = vmatprep.mubr.msk.f32.mxu1 (!%p272_p2), %vm405_vm2, %v403_v9  ;;  %v404_v11 = vld [vmem:[%s2186_s2 + $0x8] sm:$0xff] (!%p272_p2)  ;;  %vm488_vm3 = vsmask.f32 (!%p272_p2), 256  ;;  %vm487_vm4 = vcmask (!%p272_p2), 1040384   ;;  %v490_v15 = vld [vmem:[#allocation2] sm:$0x1] (!%p272_p2) }
   0x8   : > { %1761 = vmatpush3.bf16.msra.mxu0 (!%p272_p2), %v1760_v4  ;;  %vm493_vm5 = vsmask.f32 (!%p272_p2), 7938  ;;  %vm1938_vm6 = vmand (!%p272_p2), %vm487_vm4, %vm488_vm3  ;;  %v495_v17 = vld [vmem:[#allocation2 + $0x8] sm:$0x1] (!%p272_p2)  ;;  %v943_v18 = vld [vmem:[#allocation3] sm:$0x1] (!%p272_p2) }
   0x9   : > { %1762 = vmatprep.subr.bf16.mxu0 (!%p272_p2), %v1839_v3  ;;  %v491_v19 = vsel (!%p272_p2), %vm1938_vm6, 0, %v490_v15  ;;  %vm494_vm7 = vmand (!%p272_p2), %vm487_vm4, %vm493_vm5  ;;  %v944_v20 = vsel (!%p272_p2), %vm1938_vm6, 0, %v943_v18  ;;  %v946_v21 = vld [vmem:[#allocation3 + $0x8] sm:$0x1] (!%p272_p2)  ;;  %v1777_v25 = vld [vmem:[%s2188_s4] sm:$0xff] (!%p272_p2)   ;;  %vm529_vm8 = vcmask (!%p272_p2), 516096  }
   0xa   : > { %492 = vst [vmem:[#allocation2] sm:$0x1] (!%p272_p2), %v491_v19  ;;  %v496_v22 = vsel (!%p272_p2), %vm494_vm7, 0, %v495_v17  ;;  %945 = vst [vmem:[#allocation3] sm:$0x1] (!%p272_p2), %v944_v20  ;;  %v947_v23 = vsel (!%p272_p2), %vm494_vm7, 0, %v946_v21 }
   0xb   : > { %497 = vst [vmem:[#allocation2 + $0x8] sm:$0x1] (!%p272_p2), %v496_v22  ;;  %948 = vst [vmem:[#allocation3 + $0x8] sm:$0x1] (!%p272_p2), %v947_v23  ;;  %v1779_v26 = vld [vmem:[%s2188_s4 + $0x40] sm:$0xff] (!%p272_p2)   ;;  %v1778_v27 = vld [vmem:[%s2188_s4 + $0x8] sm:$0xff] (!%p272_p2)  }
   0xc   : > { %1764 = vmatpush3.bf16.msra.mxu0 (!%p272_p2), %v1763_v7  ;;  %v1781_v28 = vld [vmem:[%s2188_s4 + $0x48] sm:$0xff] (!%p272_p2)   ;;  %vm530_vm9 = vmand (!%p272_p2), %vm529_vm8, %vm488_vm3  ;;  %v1780_v30 = vld [vmem:[%s2188_s4 + $0x10] sm:$0xff] (!%p272_p2)   ;;  %vm522_vm10 = vcmask (!%p272_p2), 519168   ;;  %vm500_vm12 = vsmask.f32 (!%p272_p2), 4368  ;;  %s1842_s16 = smov (!%p272_p2), 64  }
   0xd   : > { %s2198_s28 = smov (!%p309_p3, %s1416_s28), 1  ;;  %1659 = vmatprep.subr.bf16.mxu0 %v1841_v6  ;;  %v1783_v31 = vld [vmem:[%s2188_s4 + $0x50] sm:$0xff]   ;;  %v1782_v34 = vld [vmem:[%s2188_s4 + $0x18] sm:$0xff]   ;;  %vm523_vm11 = vmand %vm522_vm10, %vm493_vm5  ;;  %vm573_vm14 = vcmask 1040896   ;;  %vm566_vm15 = vcmask 1043968   ;;  %vm837_vm4 = vcmask 1046528  }
   0xe   : > { %s1555_s15 = sshll.u32 %s2198_s28, 3  ;;  %v1784_v43 = vld [vmem:[%s2188_s4 + $0x20] sm:$0xff]   ;;  %v1785_v44 = vld [vmem:[%s2188_s4 + $0x58] sm:$0xff]   ;;  %vm1988_vm13 = vmor %vm488_vm3, %vm500_vm12  ;;  %vm975_vm7 = vcmask 1043456   ;;  %s1556_s29 = sshll.u32 %s2198_s28, 4 }
   0xf   : > { %s317_s18 = scalar_lea.vmem %s2185_s1, %s1555_s15  ;;  %s1931_s25 = scalar_lea.vmem %s2184_s0, %s1555_s15  ;;  %v1786_v48 = vld [vmem:[%s2188_s4 + $0x28] sm:$0xff]   ;;  %v1787_v51 = vld [vmem:[%s2188_s4 + $0x60] sm:$0xff]   ;;  %v1788_v54 = vld [vmem:[%s2188_s4 + $0x30] sm:$0xff]  }
  0x10   : > { %v324_v8 = vld [vmem:[%s317_s18] sm:$0xff]  ;;  %v1789_v56 = vld [vmem:[%s2188_s4 + $0x68] sm:$0xff]   ;;  %v1790_v59 = vld [vmem:[%s2188_s4 + $0x38] sm:$0xff]   ;;  %s322_s10 = scalar_lea.vmem %s2192_s8, %s1556_s29 }
  0x11   : > { %1632 = vmatmul.mubr.msk.f32.vlgmr.msra.gmra.mrb[0].mxu0 %vm329_vm1, %v324_v8  ;;  %v1934_v13 = vld [vmem:[%s1931_s25 + $0x4] sm:$0xf]  ;;  %v498_v35 = vld [vmem:[%s1931_s25] sm:$0xf]  ;;  %v1791_v0 = vld [vmem:[%s2188_s4 + $0x70] sm:$0xff]  }
  0x12   : > { %1675 = vmatprep.mubr.msk.bf16.mxu0 %vm1840_vm0, %v1841_v6  ;;  %v511_v14 = vshrl.u32 %v1934_v13, 16  ;;  %1660 = vmatpush3.bf16.msra.mxu0 %v1777_v25  ;;  %v531_v32 = vld [vmem:[#allocation2 + $0x8] sm:$0x1]  ;;  %v503_v36 = vshrl.u32 %v498_v35, 16  ;;  %v506_v38 = vshll.u32 %v498_v35, 16  ;;  %v514_v42 = vshll.u32 %v1934_v13, 16  ;;  %vm574_vm1 = vmand %vm573_vm14, %vm488_vm3 }
  0x13   : > { %1661 = vmatprep.subr.bf16.mxu0 %v1841_v6  ;;  %v524_v40 = vld [vmem:[#allocation2] sm:$0xf]  ;;  %v1793_v7 = vld [vmem:[%s2188_s4 + $0x78] sm:$0xff]   ;;  %vm623_vm3 = vsmask.f32 7424  ;;  %vm976_vm8 = vmand %vm975_vm7, %vm493_vm5 }
  0x14   : > { %v513_v24 = vrot.slane %v511_v14, 7  ;;  %v505_v37 = vrot.slane %v503_v36, 7  ;;  %v1802_v36 = vld [vmem:[%s2188_s4 + $0xb8] sm:$0xff]   ;;  %v1822_v47 = vld [vmem:[%s2190_s6 + $0x80] sm:$0xff]  }
  0x16   : > { %v518_v29 = vrot.slane %v513_v24, 4  ;;  %1662 = vmatpush3.bf16.msra.mxu0 %v1778_v27  ;;  %v508_v39 = vor.u32 %v506_v38, %v505_v37  ;;  %v509_v45 = vrot.slane %v505_v37, 4  ;;  %v516_v46 = vor.u32 %v514_v42, %v513_v24  ;;  %v1806_v42 = vld [vmem:[%s2190_s6 + $0x40] sm:$0xff]  }
  0x17   : > { %1663 = vmatprep.subr.bf16.mxu0 %v1841_v6 }
  0x18   : > { %v532_v33 = vsel %vm530_vm9, %v518_v29, %v531_v32  ;;  %v525_v41 = vsel %vm523_vm11, %v508_v39, %v524_v40  ;;  %v517_v49 = vsel %vm1988_vm13, %v509_v45, %v516_v46  ;;  %v1797_v29 = vld [vmem:[%s2188_s4 + $0x90] sm:$0xff]   ;;  %v1800_v32 = vld [vmem:[%s2188_s4 + $0xa8] sm:$0xff]   ;;  %v1804_v40 = vld [vmem:[%s2190_s6] sm:$0xff]  }
  0x19   : > { %533 = vst [vmem:[#allocation2 + $0x8] sm:$0x1] %v532_v33  ;;  %526 = vst [vmem:[#allocation2] sm:$0xf] %v525_v41  ;;  %v1801_v33 = vld [vmem:[%s2188_s4 + $0xb0] sm:$0xff]   ;;  %v1805_v41 = vld [vmem:[%s2190_s6 + $0x8] sm:$0xff]  }
  0x1a   : > { %1664 = vmatpush3.bf16.msra.mxu0 %v1780_v30  ;;  %528 = vst.msk [vmem:[#allocation2 + $0x4] sm:$0xf] %vm522_vm10, %v517_v49  ;;  %v1798_v30 = vld [vmem:[%s2188_s4 + $0x98] sm:$0xff]   ;;  %v1810_v46 = vld [vmem:[%s2190_s6 + $0x50] sm:$0xff]  }
  0x1b   : > { %1665 = vmatprep.subr.bf16.mxu0 %v1841_v6  ;;  %v1809_v45 = vld [vmem:[%s2190_s6 + $0x18] sm:$0xff]  }
  0x1c   : > { %v1812_v49 = vld [vmem:[%s2190_s6 + $0x58] sm:$0xff]  }
  0x1e   : > { %1666 = vmatpush3.bf16.msra.mxu0 %v1782_v34 }
  0x1f   : > { %1667 = vmatprep.subr.bf16.mxu0 %v1841_v6 }
  0x20   : > { %v575_v8 = vld [vmem:[#allocation2 + $0x8] sm:$0x1]  ;;  %v568_v9 = vld [vmem:[#allocation2] sm:$0xf] }
  0x22   : > { %1668 = vmatpush3.bf16.msra.mxu0 %v1784_v43  ;;  %v1807_v43 = vld [vmem:[%s2190_s6 + $0x10] sm:$0xff]  }
  0x23   : > { %1669 = vmatprep.subr.bf16.mxu0 %v1841_v6 }
  0x26   : > { %1670 = vmatpush3.bf16.msra.mxu0 %v1786_v48  ;;  %v1811_v48 = vld [vmem:[%s2190_s6 + $0x20] sm:$0xff]  }
  0x27   : > { %1671 = vmatprep.subr.bf16.mxu0 %v1841_v6 }
  0x2a   : > { %1672 = vmatpush3.bf16.msra.mxu0 %v1788_v54  ;;  %v1817_v54 = vld [vmem:[%s2190_s6 + $0x38] sm:$0xff]  }
  0x2b   : > { %1673 = vmatprep.subr.bf16.mxu0 %v1841_v6 }
  0x2e   : > { %1674 = vmatpush3.bf16.msra.mxu0 %v1790_v59 }
  0x2f   : > { %1699 = vmatprep.subr.bf16.mxu0 %v1841_v6 }
  0xe4   : > { %v399_v10 = vpop.f32.mrb[0].mxu0 }
  0xe5   : > { %v1633_v12 = vpop.f32.mrb[1].mxu0  ;;  %1634 = vmatprep.subr.mxu1 %v399_v10 }
  0xe6   : > { %1635 = vmatpush3.msra.mxu1 %v399_v10 }
  0xe7   : > { %1637 = vmatmul.mubr.msk.f32.vlgmr.msra.gmra.mrb[0].mxu1 %vm405_vm2, %v404_v11  ;;  %1639 = vmatprep.subr.bf16.mxu1 %v1841_v6  ;;  %vm567_vm2 = vmand %vm566_vm15, %vm493_vm5 }
  0xe8   : > { %1655 = vmatprep.mubr.msk.bf16.mxu1 %vm1840_vm0, %v1841_v6  ;;  %1640 = vmatpush3.bf16.msra.mxu1 %v1779_v26  ;;  %v1795_v26 = vld [vmem:[%s2188_s4 + $0x80] sm:$0xff]  }
  0xe9   : > { %1641 = vmatprep.subr.bf16.mxu1 %v1841_v6 }
  0xec   : > { %1642 = vmatpush3.bf16.msra.mxu1 %v1781_v28  ;;  %v1796_v28 = vld [vmem:[%s2188_s4 + $0x88] sm:$0xff]  }
  0xed   : > { %1643 = vmatprep.subr.bf16.mxu1 %v1841_v6 }
  0xf0   : > { %1644 = vmatpush3.bf16.msra.mxu1 %v1783_v31  ;;  %v1799_v31 = vld [vmem:[%s2188_s4 + $0xa0] sm:$0xff]  }
  0xf1   : > { %1645 = vmatprep.subr.bf16.mxu1 %v1841_v6 }
  0xf4   : > { %1646 = vmatpush3.bf16.msra.mxu1 %v1785_v44  ;;  %v1808_v44 = vld [vmem:[%s2190_s6 + $0x48] sm:$0xff]  }
  0xf5   : > { %1647 = vmatprep.subr.bf16.mxu1 %v1841_v6 }
  0xf8   : > { %1648 = vmatpush3.bf16.msra.mxu1 %v1787_v51  ;;  %v1814_v51 = vld [vmem:[%s2190_s6 + $0x60] sm:$0xff]  }
  0xf9   : > { %1649 = vmatprep.subr.bf16.mxu1 %v1841_v6 }
  0xfc   : > { %1650 = vmatpush3.bf16.msra.mxu1 %v1789_v56  ;;  %v1820_v56 = vld [vmem:[%s2190_s6 + $0x78] sm:$0xff]  }
  0xfd   : > { %1651 = vmatprep.subr.bf16.mxu1 %v1841_v6 }
 0x100   : > { %1652 = vmatpush3.bf16.msra.mxu1 %v1791_v0 }
 0x101   : > { %1653 = vmatprep.subr.bf16.mxu1 %v1841_v6 }
 0x104   : > { %1654 = vmatpush3.bf16.msra.mxu1 %v1793_v7 }
 0x105   : > { %1679 = vmatprep.subr.bf16.mxu1 %v1841_v6 }
 0x1ba   : > { %v1638_v50 = vpop.f32.mrb[0].mxu1 }
 0x1bb   : > { %v1558_v52 = vpack.c.bf16 %v1638_v50, %v1638_v50  ;;  %v478_v53 = vpop.f32.mrb[1].mxu1  ;;  %v1813_v50 = vld [vmem:[%s2190_s6 + $0x28] sm:$0xff]  }
 0x1bc   : > { %v1557_v55 = vpack.c.bf16 %v478_v53, %v478_v53  ;;  %v1816_v53 = vld [vmem:[%s2190_s6 + $0x68] sm:$0xff]  }
 0x1bd   : > { %v549_v57 = vshrl.u32 %v1558_v52, 16  ;;  %v552_v61 = vshll.u32 %v1558_v52, 16  ;;  %v1815_v52 = vld [vmem:[%s2190_s6 + $0x30] sm:$0xff]  }
 0x1be   : > { %v541_v58 = vshrl.u32 %v1557_v55, 16  ;;  %v544_v63 = vshll.u32 %v1557_v55, 16  ;;  %v1818_v55 = vld [vmem:[%s2190_s6 + $0x70] sm:$0xff]  }
 0x1bf   : > { %v551_v60 = vrot.slane %v549_v57, 7 }
 0x1c0   : > { %v543_v62 = vrot.slane %v541_v58, 7 }
 0x1c1   : > { %v554_v1 = vor.u32 %v552_v61, %v551_v60  ;;  %v556_v2 = vrot.slane %v551_v60, 4 }
 0x1c2   : > { %v547_v3 = vrot.slane %v543_v62, 4  ;;  %v546_v4 = vor.u32 %v544_v63, %v543_v62 }
 0x1c3   : > { %561 = vrot.lane.b32.xlu1 %v556_v2, %s1842_s16 }
 0x1c4   : > { %557 = vrot.lane.b32.xlu0 %v546_v4, %s1842_s16  ;;  %v555_v5 = vsel %vm1988_vm13, %v547_v3, %v554_v1  ;;  %v1490_v3 = vld [vmem:[%s2189_s5] ss:$0 sm:$0xff] }
 0x1c8   : > { %559 = vrot.lane.b32.xlu0 %v555_v5, %s1842_s16 }
 0x235   : > { %v562_v10 = vpop.permute.xlu1 %561 }
 0x236   : > { %v576_v11 = vsel %vm574_vm1, %v562_v10, %v575_v8  ;;  %v558_v12 = vpop.permute.xlu0 %557 }
 0x237   : > { %577 = vst [vmem:[#allocation2 + $0x8] sm:$0x1] %v576_v11  ;;  %v569_v13 = vsel %vm567_vm2, %v558_v12, %v568_v9 }
 0x238   : > { %570 = vst [vmem:[#allocation2] sm:$0xf] %v569_v13 }
 0x23a   : > { %v560_v14 = vpop.permute.xlu0 %559 }
 0x23b   : > { %572 = vst.msk [vmem:[#allocation2 + $0x4] sm:$0xf] %vm566_vm15, %v560_v14 }
 0x23e   : > { %v1794_v15 = vld [vmem:[#allocation2 + $0x8] ss:$0 sps:$4 sm:$0x11]  }
 0x23f   : > { %v579_v17 = vld [vmem:[#allocation2] sm:$0xf]  ;;  %v632_v21 = vshll.u32 %v1794_v15, 16  ;;  %v839_v38 = vrot.slane %v1794_v15, 1 }
 0x240   : > { %v816_v34 = vld [vmem:[#allocation2] sm:$0xe] }
 0x241   : > { %v634_v25 = vrot.slane %v632_v21, 1 }
 0x242   : > { %v580_v18 = vld [vmem:[#allocation2 + $0x4] sm:$0xf] }
 0x243   : > { %v1447_v19 = vcombine.low %v579_v17, %v580_v18  ;;  %v1481_v35 = vcombine.low %v816_v34, %v580_v18 }
 0x245   : > { %1676 = vmatmul.mubr.bf16.vlgmr.msra.gmra.mrb[4].mxu0 %v1447_v19  ;;  %v627_v20 = vshll.u32 %v1447_v19, 16  ;;  %v625_v22 = vshrl.u32 %v1447_v19, 16  ;;  %v838_v37 = vrot.slane %v1481_v35, 1 }
 0x246   : > { %1715 = vmatprep.mubr.msk.bf16.mxu0 %vm1840_vm0, %v1841_v6  ;;  %1700 = vmatpush3.bf16.msra.mxu0 %v1806_v42 }
 0x247   : > { %v629_v23 = vrot.slane %v627_v20, 1  ;;  %v840_v39 = vsel %vm837_vm4, %v838_v37, %v839_v38  ;;  %1701 = vmatprep.subr.bf16.mxu0 %v1841_v6 }
 0x249   : > { %v630_v24 = vor.u32 %v629_v23, %v625_v22  ;;  %v977_v22 = vld [vmem:[#allocation3] sm:$0xf] }
 0x24a   : > { %1702 = vmatpush3.bf16.msra.mxu0 %v1808_v44  ;;  %v1824_v44 = vld [vmem:[%s2190_s6 + $0x90] sm:$0xff]  }
 0x24b   : > { %v635_v27 = vsel %vm623_vm3, %v630_v24, %v634_v25  ;;  %1703 = vmatprep.subr.bf16.mxu0 %v1841_v6 }
 0x24c   : > { %1656 = vmatmul.mubr.bf16.vlgmr.msra.gmra.mrb[4].mxu1 %v635_v27 }
 0x24d   : > { %1680 = vmatpush3.bf16.msra.mxu1 %v1795_v26  ;;  %1695 = vmatprep.mubr.msk.bf16.mxu1 %vm1840_vm0, %v1841_v6  ;;  %v981_v26 = vld [vmem:[#allocation3 + $0x8] sm:$0x1] }
 0x24e   : > { %1681 = vmatprep.subr.bf16.mxu1 %v1841_v6  ;;  %1704 = vmatpush3.bf16.msra.mxu0 %v1810_v46  ;;  %v1826_v46 = vld [vmem:[%s2190_s6 + $0xa0] sm:$0xff]  }
 0x24f   : > { %1705 = vmatprep.subr.bf16.mxu0 %v1841_v6 }
 0x251   : > { %1682 = vmatpush3.bf16.msra.mxu1 %v1796_v28 }
 0x252   : > { %1683 = vmatprep.subr.bf16.mxu1 %v1841_v6  ;;  %1706 = vmatpush3.bf16.msra.mxu0 %v1812_v49  ;;  %v1828_v49 = vld [vmem:[%s2190_s6 + $0xb0] sm:$0xff]  }
 0x253   : > { %1707 = vmatprep.subr.bf16.mxu0 %v1841_v6 }
 0x255   : > { %1684 = vmatpush3.bf16.msra.mxu1 %v1797_v29 }
 0x256   : > { %1685 = vmatprep.subr.bf16.mxu1 %v1841_v6  ;;  %1708 = vmatpush3.bf16.msra.mxu0 %v1814_v51 }
 0x257   : > { %1709 = vmatprep.subr.bf16.mxu0 %v1841_v6 }
 0x259   : > { %1686 = vmatpush3.bf16.msra.mxu1 %v1798_v30 }
 0x25a   : > { %1687 = vmatprep.subr.bf16.mxu1 %v1841_v6  ;;  %1710 = vmatpush3.bf16.msra.mxu0 %v1816_v53 }
 0x25b   : > { %1711 = vmatprep.subr.bf16.mxu0 %v1841_v6 }
 0x25d   : > { %1688 = vmatpush3.bf16.msra.mxu1 %v1799_v31 }
 0x25e   : > { %1689 = vmatprep.subr.bf16.mxu1 %v1841_v6  ;;  %1712 = vmatpush3.bf16.msra.mxu0 %v1818_v55 }
 0x25f   : > { %1713 = vmatprep.subr.bf16.mxu0 %v1841_v6 }
 0x261   : > { %1690 = vmatpush3.bf16.msra.mxu1 %v1800_v32 }
 0x262   : > { %1691 = vmatprep.subr.bf16.mxu1 %v1841_v6  ;;  %1714 = vmatpush3.bf16.msra.mxu0 %v1820_v56 }
 0x263   : > { %1739 = vmatprep.subr.bf16.mxu0 %v1841_v6 }
 0x265   : > { %1692 = vmatpush3.bf16.msra.mxu1 %v1801_v33 }
 0x266   : > { %1693 = vmatprep.subr.bf16.mxu1 %v1841_v6 }
 0x269   : > { %1694 = vmatpush3.bf16.msra.mxu1 %v1802_v36 }
 0x26a   : > { %1719 = vmatprep.subr.bf16.mxu1 %v1841_v6 }
 0x26c   : > { %1696 = vmatmul.mubr.bf16.vlgmr.msra.gmra.mrb[8].mxu1 %v840_v39 }
 0x26d   : > { %1735 = vmatprep.mubr.msk.bf16.mxu1 %vm1840_vm0, %v1841_v6  ;;  %1720 = vmatpush3.bf16.msra.mxu1 %v1804_v40 }
 0x26e   : > { %1721 = vmatprep.subr.bf16.mxu1 %v1841_v6 }
 0x271   : > { %1722 = vmatpush3.bf16.msra.mxu1 %v1805_v41 }
 0x272   : > { %1723 = vmatprep.subr.bf16.mxu1 %v1841_v6 }
 0x275   : > { %1724 = vmatpush3.bf16.msra.mxu1 %v1807_v43  ;;  %v1823_v43 = vld [vmem:[%s2190_s6 + $0x88] sm:$0xff]  }
 0x276   : > { %1725 = vmatprep.subr.bf16.mxu1 %v1841_v6 }
 0x279   : > { %1726 = vmatpush3.bf16.msra.mxu1 %v1809_v45  ;;  %v1825_v45 = vld [vmem:[%s2190_s6 + $0x98] sm:$0xff]  }
 0x27a   : > { %1727 = vmatprep.subr.bf16.mxu1 %v1841_v6 }
 0x27d   : > { %1728 = vmatpush3.bf16.msra.mxu1 %v1811_v48  ;;  %v1827_v48 = vld [vmem:[%s2190_s6 + $0xa8] sm:$0xff]  }
 0x27e   : > { %1729 = vmatprep.subr.bf16.mxu1 %v1841_v6 }
 0x281   : > { %1730 = vmatpush3.bf16.msra.mxu1 %v1813_v50 }
 0x282   : > { %1731 = vmatprep.subr.bf16.mxu1 %v1841_v6 }
 0x285   : > { %1732 = vmatpush3.bf16.msra.mxu1 %v1815_v52  ;;  %v1829_v52 = vld [vmem:[%s2190_s6 + $0xb8] sm:$0xff]  }
 0x286   : > { %1733 = vmatprep.subr.bf16.mxu1 %v1841_v6 }
 0x289   : > { %1734 = vmatpush3.bf16.msra.mxu1 %v1817_v54 }
 0x318   : > { %v809_v57 = vpop.f32.mrb[4].mxu0 }
 0x319   : > { %v1677_v58 = vpop.f32.mrb[5].mxu0 }
 0x31a   : > { %v812_v59 = vpop.f32.mrb[6].mxu0 }
 0x31b   : > { %v1678_v60 = vpop.f32.mrb[7].mxu0 }
 0x31f   : > { %v719_v61 = vpop.f32.mrb[4].mxu1 }
 0x320   : > { %v810_v62 = vadd.f32 %v809_v57, %v719_v61  ;;  %v1657_v63 = vpop.f32.mrb[5].mxu1 }
 0x321   : > { %v722_v0 = vpop.f32.mrb[6].mxu1 }
 0x322   : > { %v813_v1 = vadd.f32 %v812_v59, %v722_v0  ;;  %v1658_v2 = vpop.f32.mrb[7].mxu1 }
 0x33f   : > { %v924_v4 = vpop.f32.mrb[8].mxu1 }
 0x340   : > { %v931_v5 = vadd.f32 %v924_v4, %v810_v62  ;;  %v1697_v7 = vpop.f32.mrb[9].mxu1 }
 0x341   : > { %v927_v8 = vpop.f32.mrb[10].mxu1 }
 0x342   : > { %v939_v9 = vadd.f32 %v1490_v3, %v931_v5  ;;  %v932_v10 = vadd.f32 %v927_v8, %v813_v1  ;;  %v1698_v11 = vpop.f32.mrb[11].mxu1 }
 0x344   : > { %v941_v12 = vmax.f32 %v939_v9, 0.0  ;;  %v940_v13 = vadd.f32 %v1490_v3, %v932_v10 }
 0x346   : > { %v1559_v14 = vpack.c.bf16 %v941_v12, %v941_v12  ;;  %v942_v15 = vmax.f32 %v940_v13, 0.0 }
 0x348   : > { %v956_v17 = vshrl.u32 %v1559_v14, 16  ;;  %v1560_v18 = vpack.c.bf16 %v942_v15, %v942_v15  ;;  %v959_v20 = vshll.u32 %v1559_v14, 16 }
 0x34a   : > { %v958_v19 = vrot.slane %v956_v17, 7  ;;  %v964_v21 = vshrl.u32 %v1560_v18, 16  ;;  %v967_v25 = vshll.u32 %v1560_v18, 16 }
 0x34c   : > { %v961_v23 = vor.u32 %v959_v20, %v958_v19  ;;  %v966_v24 = vrot.slane %v964_v21, 7  ;;  %v962_v27 = vrot.slane %v958_v19, 4 }
 0x34e   : > { %v978_v28 = vsel %vm976_vm8, %v961_v23, %v977_v22  ;;  %v969_v29 = vor.u32 %v967_v25, %v966_v24  ;;  %v971_v30 = vrot.slane %v966_v24, 4 }
 0x34f   : > { %979 = vst [vmem:[#allocation3] sm:$0xf] %v978_v28 }
 0x350   : > { %v970_v31 = vsel %vm1988_vm13, %v962_v27, %v969_v29  ;;  %v982_v32 = vsel %vm1938_vm6, %v971_v30, %v981_v26 }
 0x351   : > { %980 = vst [vmem:[#allocation3 + $0x4] sm:$0xf] %v970_v31  ;;  %983 = vst [vmem:[#allocation3 + $0x8] sm:$0x1] %v982_v32 }
 0x356   : > { %v985_v33 = vld [vmem:[#allocation3] sm:$0xf] }
 0x357   : > { %v1221_v50 = vld [vmem:[#allocation3] sm:$0xe] }
 0x358   : > { %v986_v34 = vld [vmem:[#allocation3 + $0x4] sm:$0xf]  ;;  %v1821_v36 = vld [vmem:[#allocation3 + $0x8] ss:$0 sps:$4 sm:$0x11]  }
 0x359   : > { %v1509_v35 = vcombine.low %v985_v33, %v986_v34  ;;  %v1037_v38 = vshll.u32 %v1821_v36, 16  ;;  %v1543_v51 = vcombine.low %v1221_v50, %v986_v34  ;;  %v1243_v54 = vrot.slane %v1821_v36, 1 }
 0x35b   : > { %1736 = vmatmul.mubr.bf16.vlgmr.msra.gmra.mrb[12].mxu1 %v1509_v35  ;;  %v1032_v37 = vshll.u32 %v1509_v35, 16  ;;  %v1030_v39 = vshrl.u32 %v1509_v35, 16  ;;  %v1039_v42 = vrot.slane %v1037_v38, 1  ;;  %v1242_v53 = vrot.slane %v1543_v51, 1 }
 0x35d   : > { %v1034_v40 = vrot.slane %v1032_v37, 1  ;;  %v1244_v55 = vsel %vm837_vm4, %v1242_v53, %v1243_v54 }
 0x35f   : > { %v1035_v41 = vor.u32 %v1034_v40, %v1030_v39 }
 0x361   : > { %v1040_v16 = vsel %vm623_vm3, %v1035_v41, %v1039_v42 }
 0x362   : > { %1716 = vmatmul.mubr.bf16.vlgmr.msra.gmra.mrb[8].mxu0 %v1040_v16 }
 0x363   : > { %1740 = vmatpush3.bf16.msra.mxu0 %v1822_v47  ;;  %1755 = vmatprep.mubr.msk.bf16.mxu0 %vm1840_vm0, %v1841_v6 }
 0x364   : > { %1741 = vmatprep.subr.bf16.mxu0 %v1841_v6 }
 0x367   : > { %1742 = vmatpush3.bf16.msra.mxu0 %v1823_v43 }
 0x368   : > { %1743 = vmatprep.subr.bf16.mxu0 %v1841_v6 }
 0x36b   : > { %1744 = vmatpush3.bf16.msra.mxu0 %v1824_v44 }
 0x36c   : > { %1745 = vmatprep.subr.bf16.mxu0 %v1841_v6 }
 0x36f   : > { %1746 = vmatpush3.bf16.msra.mxu0 %v1825_v45 }
 0x370   : > { %1747 = vmatprep.subr.bf16.mxu0 %v1841_v6 }
 0x373   : > { %1748 = vmatpush3.bf16.msra.mxu0 %v1826_v46 }
 0x374   : > { %1749 = vmatprep.subr.bf16.mxu0 %v1841_v6 }
 0x377   : > { %1750 = vmatpush3.bf16.msra.mxu0 %v1827_v48 }
 0x378   : > { %1751 = vmatprep.subr.bf16.mxu0 %v1841_v6 }
 0x37b   : > { %1752 = vmatpush3.bf16.msra.mxu0 %v1828_v49 }
 0x37c   : > { %1753 = vmatprep.subr.bf16.mxu0 %v1841_v6  ;;  %v1552_v6 = vld [vmem:[%s2191_s7] ss:$0 sm:$0xff] }
 0x37f   : > { %1754 = vmatpush3.bf16.msra.mxu0 %v1829_v52 }
 0x382   : > { %1756 = vmatmul.mubr.bf16.vlgmr.msra.gmra.mrb[12].mxu0 %v1244_v55 }
 0x42e   : > { %v1214_v56 = vpop.f32.mrb[12].mxu1 }
 0x42f   : > { %v1737_v57 = vpop.f32.mrb[13].mxu1 }
 0x430   : > { %v1217_v58 = vpop.f32.mrb[14].mxu1 }
 0x431   : > { %v1738_v59 = vpop.f32.mrb[15].mxu1 }
 0x435   : > { %v1124_v60 = vpop.f32.mrb[8].mxu0 }
 0x436   : > { %v1215_v61 = vadd.f32 %v1214_v56, %v1124_v60  ;;  %v1717_v62 = vpop.f32.mrb[9].mxu0 }
 0x437   : > { %v1127_v63 = vpop.f32.mrb[10].mxu0 }
 0x438   : > { %v1218_v0 = vadd.f32 %v1217_v58, %v1127_v63  ;;  %v1718_v1 = vpop.f32.mrb[11].mxu0 }
 0x455   : > { %v1328_v2 = vpop.f32.mrb[12].mxu0 }
 0x456   : > { %v1335_v3 = vadd.f32 %v1328_v2, %v1215_v61  ;;  %v1757_v4 = vpop.f32.mrb[13].mxu0 }
 0x457   : > { %v1331_v5 = vpop.f32.mrb[14].mxu0 }
 0x458   : > { %v1343_v7 = vadd.f32 %v1552_v6, %v1335_v3  ;;  %v1336_v8 = vadd.f32 %v1331_v5, %v1218_v0  ;;  %v1758_v9 = vpop.f32.mrb[15].mxu0 }
 0x45a   : > { %v1345_v10 = vmax.f32 %v1343_v7, 0.0  ;;  %v1344_v11 = vadd.f32 %v1552_v6, %v1336_v8 }
 0x45c   : > { %1347 = vst [vmem:[%s322_s10] sm:$0xff] %v1345_v10  ;;  %v1346_v12 = vmax.f32 %v1344_v11, 0.0 }
 0x45e   : > { %1348 = vst [vmem:[%s322_s10 + $0x8] sm:$0xff] %v1346_v12 }
 0x45f PF: > { %s18_s27 = sadd.s32 1, %s1837_s27  }
 0x460   : > { %p15_p4 = scmp.ge.s32.totalorder %s18_s27, 4  }
 0x462   :  { %17 = sbr.rel (!%p15_p4) target bundleno = 1 (0x1), region = 89 }

</bundles_post_ra>
